<compile_context>
chip_gen: v7x
topology: tpu7x:2x2x1
jax: 0.10.0
libtpu: 0.0.40
codegen_flags: <defaults>
</compile_context>

<pallas_src>
import functools

import numpy as np

import jax
import jax.numpy as jnp
from jax.experimental import pallas as pl
from jax.experimental.pallas import tpu as pltpu


# ----------------------------------------------------------------------------
# Fused kernel: conv1 + ReLU + conv2 + ReLU + conv3, all in VMEM, one launch.
#
#   patches1_ref : (9, N*100)     bf16   space-to-depth packed, padded input
#   s2_ref       : (9, N*100, N*25) bf16 0/1 gather matrices for conv2 taps
#   w1m_ref      : (16, 9)        bf16
#   b1_ref       : (16, 1)        f32
#   w2t_ref      : (9, 8, 16)     bf16   per-tap conv2 weights
#   b2_ref       : (8, 1)         f32
#   w3m_ref      : (8, 25)        f32
#   b3_ref       : (1, 1)         f32
#   out_ref      : (N, 1)         f32
# ----------------------------------------------------------------------------
def _onion_fused_kernel(patches1_ref, s2_ref, w1m_ref, b1_ref, w2t_ref, b2_ref,
                        w3m_ref, b3_ref, out_ref, *, n_batch):
    m2 = n_batch * 25  # conv2 output columns (n, ho, wo), ho/wo in [0, 5)

    # ---- Layer 1: (16, 9) @ (9, N*100) + b1, ReLU.  Lane-dense (N*100 lanes).
    act1 = jnp.dot(w1m_ref[...], patches1_ref[...],
                   preferred_element_type=jnp.float32)
    act1 = jnp.maximum(act1 + b1_ref[...], 0.0)            # f32 epilogue
    act1_bf = act1.astype(jnp.bfloat16)

    # ---- Layer 2: in-kernel "im2col" via selection matmuls (MXU gather) plus
    #      9 shifted matmuls accumulated in f32.  Zero columns of s2 implement
    #      the pad=1 border, so there is no boundary special-casing.
    acc2 = None
    for p in range(9):                                     # 3x3 taps, unrolled
        gathered = jnp.dot(act1_bf, s2_ref[p],
                           preferred_element_type=jnp.float32)      # (16, m2)
        tap = jnp.dot(w2t_ref[p], gathered.astype(jnp.bfloat16),
                      preferred_element_type=jnp.float32)           # (8, m2)
        acc2 = tap if acc2 is None else acc2 + tap
    act2 = jnp.maximum(acc2 + b2_ref[...], 0.0)            # (8, N*25) f32

    # ---- Layer 3: 5x5x8 valid conv -> 1x1: a full contraction per image,
    #      kept entirely in f32 on the VPU/XLU.
    for n in range(n_batch):                               # N is tiny; unrolled
        win = act2[:, n * 25:(n + 1) * 25]                 # (8, 25)
        prod = win * w3m_ref[...]
        val = jnp.sum(jnp.sum(prod, axis=1, keepdims=True),
                      axis=0, keepdims=True)               # (1, 1)
        out_ref[n:n + 1, :] = val + b3_ref[...]


# ----------------------------------------------------------------------------
# Host-side, one-time constant / weight repacking.
# ----------------------------------------------------------------------------
def build_conv2_selection(n_batch):
    """0/1 gather matrices for conv2 (3x3, stride=2, pad=1) over a 10x10 input.

    s2[p, m1, m2] == 1 iff act1 column m1 = (n, h_in, w_in) is what conv2 tap
    p = (kh, kw) reads when producing output column m2 = (n, ho, wo); taps that
    fall in the padding are all-zero columns.
    """
    H1 = W1 = 10
    HO = WO = 5
    m1_sz = n_batch * H1 * W1
    m2_sz = n_batch * HO * WO
    s = np.zeros((9, m1_sz, m2_sz), np.float32)
    for kh in range(3):
        for kw in range(3):
            p = kh * 3 + kw
            for n in range(n_batch):
                for ho in range(HO):
                    for wo in range(WO):
                        h_in = 2 * ho + kh - 1
                        w_in = 2 * wo + kw - 1
                        if 0 <= h_in < H1 and 0 <= w_in < W1:
                            m1 = (n * H1 + h_in) * W1 + w_in
                            m2 = (n * HO + ho) * WO + wo
                            s[p, m1, m2] = 1.0
    return jnp.asarray(s, dtype=jnp.bfloat16)


def prepare_kernel_params(params, n_batch):
    """One-time repack of the (tiny) weights into the kernel's layouts."""
    w1m = params["w1"].reshape(9, 16).T.astype(jnp.bfloat16)            # (16, 9)
    w2t = (params["w2"].reshape(9, 16, 8)
           .transpose(0, 2, 1).astype(jnp.bfloat16))                    # (9, 8, 16)
    w3m = (params["w3"][:, :, :, 0].transpose(2, 0, 1)
           .reshape(8, 25).astype(jnp.float32))                         # (8, 25)
    return {
        "w1m": w1m,
        "b1": params["b1"].reshape(16, 1).astype(jnp.float32),
        "w2t": w2t,
        "b2": params["b2"].reshape(8, 1).astype(jnp.float32),
        "w3m": w3m,
        "b3": params["b3"].reshape(1, 1).astype(jnp.float32),
        "s2": build_conv2_selection(n_batch),
    }


# ----------------------------------------------------------------------------
# Forward pass (matches PyTorch OnionEncoder, specialized to 1x28x28 inputs).
# ----------------------------------------------------------------------------
@jax.jit
def onion_encoder_forward(x_nchw, prep):
    N, C, H, W = x_nchw.shape
    assert C == 1 and H == 28 and W == 28, "fused kernel is specialized to 1x28x28"

    # The only XLA-side glue: pad + space-to-depth of the 7 KB input (conv1 has
    # stride == kernel == 3 and C == 1, so its im2col is a pure repack).
    xp = jnp.pad(x_nchw.reshape(N, 28, 28), ((0, 0), (1, 1), (1, 1)))   # (N,30,30)
    patches1 = (
        xp.reshape(N, 10, 3, 10, 3)
        .transpose(2, 4, 0, 1, 3)                 # (kh, kw, n, h1, w1)
        .reshape(9, N * 100)
        .astype(jnp.bfloat16)
    )

    out = pl.pallas_call(
        functools.partial(_onion_fused_kernel, n_batch=N),
        out_shape=jax.ShapeDtypeStruct((N, 1), jnp.float32),
        in_specs=[pl.BlockSpec(memory_space=pltpu.MemorySpace.VMEM)] * 8,
        out_specs=pl.BlockSpec(memory_space=pltpu.MemorySpace.VMEM),
    )(patches1, prep["s2"], prep["w1m"], prep["b1"],
      prep["w2t"], prep["b2"], prep["w3m"], prep["b3"])

    return out.reshape(N, 1, 1, 1)


# ----------------------------------------------------------------------------
# Deterministic parameter init (same shapes as the torch module; torch-like
# uniform(-1/sqrt(fan_in), 1/sqrt(fan_in))).  Weights stored in HWIO.
# ----------------------------------------------------------------------------
def init_params(key):
    def conv_init(key, kh, kw, cin, cout):
        w_key, b_key = jax.random.split(key)
        bound = 1.0 / jnp.sqrt(jnp.float32(cin * kh * kw))
        w = jax.random.uniform(w_key, (kh, kw, cin, cout), jnp.float32, -bound, bound)
        b = jax.random.uniform(b_key, (cout,), jnp.float32, -bound, bound)
        return w, b

    k1, k2, k3 = jax.random.split(key, 3)
    w1, b1 = conv_init(k1, 3, 3, 1, 16)
    w2, b2 = conv_init(k2, 3, 3, 16, 8)
    w3, b3 = conv_init(k3, 5, 5, 8, 1)
    return {"w1": w1, "b1": b1, "w2": w2, "b2": b2, "w3": w3, "b3": b3}


# Pure-JAX reference (lax.conv) for correctness checking.
#   bf16_operands=True mirrors the kernel's precision exactly (conv1/conv2
#   operands rounded to bf16, f32 accumulation/epilogue, conv3 fully f32).
def reference_forward(x_nchw, params, *, bf16_operands=False):
    rd = lambda a: a.astype(jnp.bfloat16).astype(jnp.float32)

    def conv(x, w_hwio, b, stride, pad, relu, round_ops):
        if bf16_operands and round_ops:
            x, w_hwio = rd(x), rd(w_hwio)
        y = jax.lax.conv_general_dilated(
            x, w_hwio,
            window_strides=(stride, stride),
            padding=[(pad, pad), (pad, pad)],
            dimension_numbers=("NCHW", "HWIO", "NCHW"),
            precision=jax.lax.Precision.HIGHEST,
        )
        y = y + b.reshape(1, -1, 1, 1)
        return jnp.maximum(y, 0.0) if relu else y

    x = conv(x_nchw, params["w1"], params["b1"], 3, 1, True, True)
    x = conv(x, params["w2"], params["b2"], 2, 1, True, True)
    x = conv(x, params["w3"], params["b3"], 1, 0, False, False)
    return x


if __name__ == "__main__":
    key = jax.random.PRNGKey(0)
    pkey, xkey = jax.random.split(key)
    params = init_params(pkey)

    # MNIST-like input: (batch=2, channels=1, 28, 28) -> output (2, 1, 1, 1)
    x = jax.random.normal(xkey, (2, 1, 28, 28), dtype=jnp.float32)
    prep = prepare_kernel_params(params, n_batch=2)

    out = onion_encoder_forward(x, prep)
    out = jax.block_until_ready(out)
    assert out.shape == (2, 1, 1, 1), out.shape

    # Tight check against a precision-matched reference (same bf16 operand
    # rounding, f32 accumulation) -- catches any layout/indexing bug decisively.
    ref_matched = reference_forward(x, params, bf16_operands=True)
    assert jnp.allclose(out, ref_matched, atol=5e-4, rtol=5e-4), (out, ref_matched)

    # Sanity check against the full-f32 reference; the slack is the expected
    # bf16-operand quantization error (precision relaxation per perf review).
    ref_f32 = reference_forward(x, params, bf16_operands=False)
    assert jnp.allclose(out, ref_f32, atol=2e-2, rtol=2e-2), (out, ref_f32)

    print("KERNEL_OK")
</pallas_src>

<mosaic_0001>
module attributes {stable_mosaic.version = 11 : i64} {
  func.func @_onion_fused_kernel(%arg0: memref<9x200xbf16, #tpu.memory_space<vmem>>, %arg1: memref<9x200x50xbf16, #tpu.memory_space<vmem>>, %arg2: memref<16x9xbf16, #tpu.memory_space<vmem>>, %arg3: memref<16x1xf32, #tpu.memory_space<vmem>>, %arg4: memref<9x8x16xbf16, #tpu.memory_space<vmem>>, %arg5: memref<8x1xf32, #tpu.memory_space<vmem>>, %arg6: memref<8x25xf32, #tpu.memory_space<vmem>>, %arg7: memref<1x1xf32, #tpu.memory_space<vmem>>, %arg8: memref<2x1xf32, #tpu.memory_space<vmem>>) attributes {dimension_semantics = [], scalar_prefetch = 0 : i64, scratch_operands = 0 : i64, tpu.core_type = #tpu.core_type<tc>} {
    %c0 = arith.constant 0 : index
    %c0_0 = arith.constant 0 : index
    %0 = vector.load %arg2[%c0, %c0_0] : memref<16x9xbf16, #tpu.memory_space<vmem>>, vector<16x9xbf16>
    %c0_1 = arith.constant 0 : index
    %c0_2 = arith.constant 0 : index
    %1 = vector.load %arg0[%c0_1, %c0_2] : memref<9x200xbf16, #tpu.memory_space<vmem>>, vector<9x200xbf16>
    %cst = arith.constant dense<0.000000e+00> : vector<16x200xf32>
    %2 = tpu.matmul %0, %1, %cst {dimension_numbers = #tpu.dot_dimension_numbers<[1], [0], [0], [1], [0, 0, 1, 1], [], []>} : vector<16x9xbf16>, vector<9x200xbf16>, vector<16x200xf32> -> vector<16x200xf32>
    %c0_3 = arith.constant 0 : index
    %c0_4 = arith.constant 0 : index
    %3 = vector.load %arg3[%c0_3, %c0_4] : memref<16x1xf32, #tpu.memory_space<vmem>>, vector<16x1xf32>
    %4 = vector.broadcast %3 : vector<16x1xf32> to vector<16x200xf32>
    %5 = arith.addf %2, %4 : vector<16x200xf32>
    %cst_5 = arith.constant 0.000000e+00 : f32
    %6 = vector.broadcast %cst_5 : f32 to vector<16x200xf32>
    %7 = arith.maximumf %5, %6 : vector<16x200xf32>
    %8 = arith.truncf %7 : vector<16x200xf32> to vector<16x200xbf16>
    %c0_6 = arith.constant 0 : index
    %c0_7 = arith.constant 0 : index
    %c0_8 = arith.constant 0 : index
    %9 = vector.load %arg1[%c0_6, %c0_7, %c0_8] : memref<9x200x50xbf16, #tpu.memory_space<vmem>>, vector<1x200x50xbf16>
    %10 = vector.shape_cast %9 : vector<1x200x50xbf16> to vector<200x50xbf16>
    %cst_9 = arith.constant dense<0.000000e+00> : vector<16x50xf32>
    %11 = tpu.matmul %8, %10, %cst_9 {dimension_numbers = #tpu.dot_dimension_numbers<[1], [0], [0], [1], [0, 0, 1, 1], [], []>} : vector<16x200xbf16>, vector<200x50xbf16>, vector<16x50xf32> -> vector<16x50xf32>
    %c0_10 = arith.constant 0 : index
    %c0_11 = arith.constant 0 : index
    %c0_12 = arith.constant 0 : index
    %12 = vector.load %arg4[%c0_10, %c0_11, %c0_12] : memref<9x8x16xbf16, #tpu.memory_space<vmem>>, vector<1x8x16xbf16>
    %13 = vector.shape_cast %12 : vector<1x8x16xbf16> to vector<8x16xbf16>
    %14 = arith.truncf %11 : vector<16x50xf32> to vector<16x50xbf16>
    %cst_13 = arith.constant dense<0.000000e+00> : vector<8x50xf32>
    %15 = tpu.matmul %13, %14, %cst_13 {dimension_numbers = #tpu.dot_dimension_numbers<[1], [0], [0], [1], [0, 0, 1, 1], [], []>} : vector<8x16xbf16>, vector<16x50xbf16>, vector<8x50xf32> -> vector<8x50xf32>
    %c1 = arith.constant 1 : index
    %c0_14 = arith.constant 0 : index
    %c0_15 = arith.constant 0 : index
    %16 = vector.load %arg1[%c1, %c0_14, %c0_15] : memref<9x200x50xbf16, #tpu.memory_space<vmem>>, vector<1x200x50xbf16>
    %17 = vector.shape_cast %16 : vector<1x200x50xbf16> to vector<200x50xbf16>
    %cst_16 = arith.constant dense<0.000000e+00> : vector<16x50xf32>
    %18 = tpu.matmul %8, %17, %cst_16 {dimension_numbers = #tpu.dot_dimension_numbers<[1], [0], [0], [1], [0, 0, 1, 1], [], []>} : vector<16x200xbf16>, vector<200x50xbf16>, vector<16x50xf32> -> vector<16x50xf32>
    %c1_17 = arith.constant 1 : index
    %c0_18 = arith.constant 0 : index
    %c0_19 = arith.constant 0 : index
    %19 = vector.load %arg4[%c1_17, %c0_18, %c0_19] : memref<9x8x16xbf16, #tpu.memory_space<vmem>>, vector<1x8x16xbf16>
    %20 = vector.shape_cast %19 : vector<1x8x16xbf16> to vector<8x16xbf16>
    %21 = arith.truncf %18 : vector<16x50xf32> to vector<16x50xbf16>
    %cst_20 = arith.constant dense<0.000000e+00> : vector<8x50xf32>
    %22 = tpu.matmul %20, %21, %cst_20 {dimension_numbers = #tpu.dot_dimension_numbers<[1], [0], [0], [1], [0, 0, 1, 1], [], []>} : vector<8x16xbf16>, vector<16x50xbf16>, vector<8x50xf32> -> vector<8x50xf32>
    %23 = arith.addf %15, %22 : vector<8x50xf32>
    %c2 = arith.constant 2 : index
    %c0_21 = arith.constant 0 : index
    %c0_22 = arith.constant 0 : index
    %24 = vector.load %arg1[%c2, %c0_21, %c0_22] : memref<9x200x50xbf16, #tpu.memory_space<vmem>>, vector<1x200x50xbf16>
    %25 = vector.shape_cast %24 : vector<1x200x50xbf16> to vector<200x50xbf16>
    %cst_23 = arith.constant dense<0.000000e+00> : vector<16x50xf32>
    %26 = tpu.matmul %8, %25, %cst_23 {dimension_numbers = #tpu.dot_dimension_numbers<[1], [0], [0], [1], [0, 0, 1, 1], [], []>} : vector<16x200xbf16>, vector<200x50xbf16>, vector<16x50xf32> -> vector<16x50xf32>
    %c2_24 = arith.constant 2 : index
    %c0_25 = arith.constant 0 : index
    %c0_26 = arith.constant 0 : index
    %27 = vector.load %arg4[%c2_24, %c0_25, %c0_26] : memref<9x8x16xbf16, #tpu.memory_space<vmem>>, vector<1x8x16xbf16>
    %28 = vector.shape_cast %27 : vector<1x8x16xbf16> to vector<8x16xbf16>
    %29 = arith.truncf %26 : vector<16x50xf32> to vector<16x50xbf16>
    %cst_27 = arith.constant dense<0.000000e+00> : vector<8x50xf32>
    %30 = tpu.matmul %28, %29, %cst_27 {dimension_numbers = #tpu.dot_dimension_numbers<[1], [0], [0], [1], [0, 0, 1, 1], [], []>} : vector<8x16xbf16>, vector<16x50xbf16>, vector<8x50xf32> -> vector<8x50xf32>
    %31 = arith.addf %23, %30 : vector<8x50xf32>
    %c3 = arith.constant 3 : index
    %c0_28 = arith.constant 0 : index
    %c0_29 = arith.constant 0 : index
    %32 = vector.load %arg1[%c3, %c0_28, %c0_29] : memref<9x200x50xbf16, #tpu.memory_space<vmem>>, vector<1x200x50xbf16>
    %33 = vector.shape_cast %32 : vector<1x200x50xbf16> to vector<200x50xbf16>
    %cst_30 = arith.constant dense<0.000000e+00> : vector<16x50xf32>
    %34 = tpu.matmul %8, %33, %cst_30 {dimension_numbers = #tpu.dot_dimension_numbers<[1], [0], [0], [1], [0, 0, 1, 1], [], []>} : vector<16x200xbf16>, vector<200x50xbf16>, vector<16x50xf32> -> vector<16x50xf32>
    %c3_31 = arith.constant 3 : index
    %c0_32 = arith.constant 0 : index
    %c0_33 = arith.constant 0 : index
    %35 = vector.load %arg4[%c3_31, %c0_32, %c0_33] : memref<9x8x16xbf16, #tpu.memory_space<vmem>>, vector<1x8x16xbf16>
    %36 = vector.shape_cast %35 : vector<1x8x16xbf16> to vector<8x16xbf16>
    %37 = arith.truncf %34 : vector<16x50xf32> to vector<16x50xbf16>
    %cst_34 = arith.constant dense<0.000000e+00> : vector<8x50xf32>
    %38 = tpu.matmul %36, %37, %cst_34 {dimension_numbers = #tpu.dot_dimension_numbers<[1], [0], [0], [1], [0, 0, 1, 1], [], []>} : vector<8x16xbf16>, vector<16x50xbf16>, vector<8x50xf32> -> vector<8x50xf32>
    %39 = arith.addf %31, %38 : vector<8x50xf32>
    %c4 = arith.constant 4 : index
    %c0_35 = arith.constant 0 : index
    %c0_36 = arith.constant 0 : index
    %40 = vector.load %arg1[%c4, %c0_35, %c0_36] : memref<9x200x50xbf16, #tpu.memory_space<vmem>>, vector<1x200x50xbf16>
    %41 = vector.shape_cast %40 : vector<1x200x50xbf16> to vector<200x50xbf16>
    %cst_37 = arith.constant dense<0.000000e+00> : vector<16x50xf32>
    %42 = tpu.matmul %8, %41, %cst_37 {dimension_numbers = #tpu.dot_dimension_numbers<[1], [0], [0], [1], [0, 0, 1, 1], [], []>} : vector<16x200xbf16>, vector<200x50xbf16>, vector<16x50xf32> -> vector<16x50xf32>
    %c4_38 = arith.constant 4 : index
    %c0_39 = arith.constant 0 : index
    %c0_40 = arith.constant 0 : index
    %43 = vector.load %arg4[%c4_38, %c0_39, %c0_40] : memref<9x8x16xbf16, #tpu.memory_space<vmem>>, vector<1x8x16xbf16>
    %44 = vector.shape_cast %43 : vector<1x8x16xbf16> to vector<8x16xbf16>
    %45 = arith.truncf %42 : vector<16x50xf32> to vector<16x50xbf16>
    %cst_41 = arith.constant dense<0.000000e+00> : vector<8x50xf32>
    %46 = tpu.matmul %44, %45, %cst_41 {dimension_numbers = #tpu.dot_dimension_numbers<[1], [0], [0], [1], [0, 0, 1, 1], [], []>} : vector<8x16xbf16>, vector<16x50xbf16>, vector<8x50xf32> -> vector<8x50xf32>
    %47 = arith.addf %39, %46 : vector<8x50xf32>
    %c5 = arith.constant 5 : index
    %c0_42 = arith.constant 0 : index
    %c0_43 = arith.constant 0 : index
    %48 = vector.load %arg1[%c5, %c0_42, %c0_43] : memref<9x200x50xbf16, #tpu.memory_space<vmem>>, vector<1x200x50xbf16>
    %49 = vector.shape_cast %48 : vector<1x200x50xbf16> to vector<200x50xbf16>
    %cst_44 = arith.constant dense<0.000000e+00> : vector<16x50xf32>
    %50 = tpu.matmul %8, %49, %cst_44 {dimension_numbers = #tpu.dot_dimension_numbers<[1], [0], [0], [1], [0, 0, 1, 1], [], []>} : vector<16x200xbf16>, vector<200x50xbf16>, vector<16x50xf32> -> vector<16x50xf32>
    %c5_45 = arith.constant 5 : index
    %c0_46 = arith.constant 0 : index
    %c0_47 = arith.constant 0 : index
    %51 = vector.load %arg4[%c5_45, %c0_46, %c0_47] : memref<9x8x16xbf16, #tpu.memory_space<vmem>>, vector<1x8x16xbf16>
    %52 = vector.shape_cast %51 : vector<1x8x16xbf16> to vector<8x16xbf16>
    %53 = arith.truncf %50 : vector<16x50xf32> to vector<16x50xbf16>
    %cst_48 = arith.constant dense<0.000000e+00> : vector<8x50xf32>
    %54 = tpu.matmul %52, %53, %cst_48 {dimension_numbers = #tpu.dot_dimension_numbers<[1], [0], [0], [1], [0, 0, 1, 1], [], []>} : vector<8x16xbf16>, vector<16x50xbf16>, vector<8x50xf32> -> vector<8x50xf32>
    %55 = arith.addf %47, %54 : vector<8x50xf32>
    %c6 = arith.constant 6 : index
    %c0_49 = arith.constant 0 : index
    %c0_50 = arith.constant 0 : index
    %56 = vector.load %arg1[%c6, %c0_49, %c0_50] : memref<9x200x50xbf16, #tpu.memory_space<vmem>>, vector<1x200x50xbf16>
    %57 = vector.shape_cast %56 : vector<1x200x50xbf16> to vector<200x50xbf16>
    %cst_51 = arith.constant dense<0.000000e+00> : vector<16x50xf32>
    %58 = tpu.matmul %8, %57, %cst_51 {dimension_numbers = #tpu.dot_dimension_numbers<[1], [0], [0], [1], [0, 0, 1, 1], [], []>} : vector<16x200xbf16>, vector<200x50xbf16>, vector<16x50xf32> -> vector<16x50xf32>
    %c6_52 = arith.constant 6 : index
    %c0_53 = arith.constant 0 : index
    %c0_54 = arith.constant 0 : index
    %59 = vector.load %arg4[%c6_52, %c0_53, %c0_54] : memref<9x8x16xbf16, #tpu.memory_space<vmem>>, vector<1x8x16xbf16>
    %60 = vector.shape_cast %59 : vector<1x8x16xbf16> to vector<8x16xbf16>
    %61 = arith.truncf %58 : vector<16x50xf32> to vector<16x50xbf16>
    %cst_55 = arith.constant dense<0.000000e+00> : vector<8x50xf32>
    %62 = tpu.matmul %60, %61, %cst_55 {dimension_numbers = #tpu.dot_dimension_numbers<[1], [0], [0], [1], [0, 0, 1, 1], [], []>} : vector<8x16xbf16>, vector<16x50xbf16>, vector<8x50xf32> -> vector<8x50xf32>
    %63 = arith.addf %55, %62 : vector<8x50xf32>
    %c7 = arith.constant 7 : index
    %c0_56 = arith.constant 0 : index
    %c0_57 = arith.constant 0 : index
    %64 = vector.load %arg1[%c7, %c0_56, %c0_57] : memref<9x200x50xbf16, #tpu.memory_space<vmem>>, vector<1x200x50xbf16>
    %65 = vector.shape_cast %64 : vector<1x200x50xbf16> to vector<200x50xbf16>
    %cst_58 = arith.constant dense<0.000000e+00> : vector<16x50xf32>
    %66 = tpu.matmul %8, %65, %cst_58 {dimension_numbers = #tpu.dot_dimension_numbers<[1], [0], [0], [1], [0, 0, 1, 1], [], []>} : vector<16x200xbf16>, vector<200x50xbf16>, vector<16x50xf32> -> vector<16x50xf32>
    %c7_59 = arith.constant 7 : index
    %c0_60 = arith.constant 0 : index
    %c0_61 = arith.constant 0 : index
    %67 = vector.load %arg4[%c7_59, %c0_60, %c0_61] : memref<9x8x16xbf16, #tpu.memory_space<vmem>>, vector<1x8x16xbf16>
    %68 = vector.shape_cast %67 : vector<1x8x16xbf16> to vector<8x16xbf16>
    %69 = arith.truncf %66 : vector<16x50xf32> to vector<16x50xbf16>
    %cst_62 = arith.constant dense<0.000000e+00> : vector<8x50xf32>
    %70 = tpu.matmul %68, %69, %cst_62 {dimension_numbers = #tpu.dot_dimension_numbers<[1], [0], [0], [1], [0, 0, 1, 1], [], []>} : vector<8x16xbf16>, vector<16x50xbf16>, vector<8x50xf32> -> vector<8x50xf32>
    %71 = arith.addf %63, %70 : vector<8x50xf32>
    %c8 = arith.constant 8 : index
    %c0_63 = arith.constant 0 : index
    %c0_64 = arith.constant 0 : index
    %72 = vector.load %arg1[%c8, %c0_63, %c0_64] : memref<9x200x50xbf16, #tpu.memory_space<vmem>>, vector<1x200x50xbf16>
    %73 = vector.shape_cast %72 : vector<1x200x50xbf16> to vector<200x50xbf16>
    %cst_65 = arith.constant dense<0.000000e+00> : vector<16x50xf32>
    %74 = tpu.matmul %8, %73, %cst_65 {dimension_numbers = #tpu.dot_dimension_numbers<[1], [0], [0], [1], [0, 0, 1, 1], [], []>} : vector<16x200xbf16>, vector<200x50xbf16>, vector<16x50xf32> -> vector<16x50xf32>
    %c8_66 = arith.constant 8 : index
    %c0_67 = arith.constant 0 : index
    %c0_68 = arith.constant 0 : index
    %75 = vector.load %arg4[%c8_66, %c0_67, %c0_68] : memref<9x8x16xbf16, #tpu.memory_space<vmem>>, vector<1x8x16xbf16>
    %76 = vector.shape_cast %75 : vector<1x8x16xbf16> to vector<8x16xbf16>
    %77 = arith.truncf %74 : vector<16x50xf32> to vector<16x50xbf16>
    %cst_69 = arith.constant dense<0.000000e+00> : vector<8x50xf32>
    %78 = tpu.matmul %76, %77, %cst_69 {dimension_numbers = #tpu.dot_dimension_numbers<[1], [0], [0], [1], [0, 0, 1, 1], [], []>} : vector<8x16xbf16>, vector<16x50xbf16>, vector<8x50xf32> -> vector<8x50xf32>
    %79 = arith.addf %71, %78 : vector<8x50xf32>
    %c0_70 = arith.constant 0 : index
    %c0_71 = arith.constant 0 : index
    %80 = vector.load %arg5[%c0_70, %c0_71] : memref<8x1xf32, #tpu.memory_space<vmem>>, vector<8x1xf32>
    %81 = vector.broadcast %80 : vector<8x1xf32> to vector<8x50xf32>
    %82 = arith.addf %79, %81 : vector<8x50xf32>
    %cst_72 = arith.constant 0.000000e+00 : f32
    %83 = vector.broadcast %cst_72 : f32 to vector<8x50xf32>
    %84 = arith.maximumf %82, %83 : vector<8x50xf32>
    %85 = vector.extract_strided_slice %84 {offsets = [0, 0], sizes = [8, 25], strides = [1, 1]} : vector<8x50xf32> to vector<8x25xf32>
    %c0_73 = arith.constant 0 : index
    %c0_74 = arith.constant 0 : index
    %86 = vector.load %arg6[%c0_73, %c0_74] : memref<8x25xf32, #tpu.memory_space<vmem>>, vector<8x25xf32>
    %87 = arith.mulf %85, %86 : vector<8x25xf32>
    %cst_75 = arith.constant dense<0.000000e+00> : vector<8xf32>
    %88 = vector.multi_reduction <add>, %87, %cst_75 [1] : vector<8x25xf32> to vector<8xf32>
    %89 = vector.shape_cast %88 : vector<8xf32> to vector<8x1xf32>
    %cst_76 = arith.constant dense<0.000000e+00> : vector<1xf32>
    %90 = vector.multi_reduction <add>, %89, %cst_76 [0] : vector<8x1xf32> to vector<1xf32>
    %91 = vector.shape_cast %90 : vector<1xf32> to vector<1x1xf32>
    %c0_77 = arith.constant 0 : index
    %c0_78 = arith.constant 0 : index
    %92 = vector.load %arg7[%c0_77, %c0_78] : memref<1x1xf32, #tpu.memory_space<vmem>>, vector<1x1xf32>
    %93 = arith.addf %91, %92 : vector<1x1xf32>
    %c0_79 = arith.constant 0 : index
    %c0_80 = arith.constant 0 : index
    %94 = vector.load %arg8[%c0_79, %c0_80] : memref<2x1xf32, #tpu.memory_space<vmem>>, vector<1x1xf32>
    tpu.vector_store %arg8[%c0_79, %c0_80], %93 {strides = array<i32>} : memref<2x1xf32, #tpu.memory_space<vmem>>, vector<1x1xf32>,
    %95 = vector.extract_strided_slice %84 {offsets = [0, 25], sizes = [8, 25], strides = [1, 1]} : vector<8x50xf32> to vector<8x25xf32>
    %c0_81 = arith.constant 0 : index
    %c0_82 = arith.constant 0 : index
    %96 = vector.load %arg6[%c0_81, %c0_82] : memref<8x25xf32, #tpu.memory_space<vmem>>, vector<8x25xf32>
    %97 = arith.mulf %95, %96 : vector<8x25xf32>
    %cst_83 = arith.constant dense<0.000000e+00> : vector<8xf32>
    %98 = vector.multi_reduction <add>, %97, %cst_83 [1] : vector<8x25xf32> to vector<8xf32>
    %99 = vector.shape_cast %98 : vector<8xf32> to vector<8x1xf32>
    %cst_84 = arith.constant dense<0.000000e+00> : vector<1xf32>
    %100 = vector.multi_reduction <add>, %99, %cst_84 [0] : vector<8x1xf32> to vector<1xf32>
    %101 = vector.shape_cast %100 : vector<1xf32> to vector<1x1xf32>
    %c0_85 = arith.constant 0 : index
    %c0_86 = arith.constant 0 : index
    %102 = vector.load %arg7[%c0_85, %c0_86] : memref<1x1xf32, #tpu.memory_space<vmem>>, vector<1x1xf32>
    %103 = arith.addf %101, %102 : vector<1x1xf32>
    %c1_87 = arith.constant 1 : index
    %c0_88 = arith.constant 0 : index
    %104 = vector.load %arg8[%c1_87, %c0_88] : memref<2x1xf32, #tpu.memory_space<vmem>>, vector<1x1xf32>
    tpu.vector_store %arg8[%c1_87, %c0_88], %103 {strides = array<i32>} : memref<2x1xf32, #tpu.memory_space<vmem>>, vector<1x1xf32>,
    return
  }
}

</mosaic_0001>

<bundles_post_ra>
// kernel: onion_encoder_forward.1
= control target key start
LH: loop header
LB: loop body
LE: loop exit
PB: predicated region body
PF: predicated region fallthrough
CT: control target
= control target key end

     0   :  { %vm65_vm0 = vcmask 1043456   ;;  %vm66_vm1 = vcmask 1044480   ;;  %v2451_v1 = vmov 0   ;;  %v2452_v2 = vmov 65535   ;;  %s2455_s18 = smov 25   ;;  %s3107_s0 = inlined_call_operand.vmem [shape: bf16[9,200], index: 0, kind: input, shape index: {}]   ;;  %s3108_s3 = inlined_call_operand.vmem [shape: f32[16,1], index: 3, kind: input, shape index: {}]   ;;  %s3109_s2 = inlined_call_operand.vmem [shape: bf16[16,9], index: 2, kind: input, shape index: {}]   ;;  %s3110_s1 = inlined_call_operand.vmem [shape: bf16[9,200,50], index: 1, kind: input, shape index: {}]   ;;  %s3111_s4 = inlined_call_operand.vmem [shape: bf16[9,8,16], index: 4, kind: input, shape index: {}]   ;;  %s3112_s5 = inlined_call_operand.vmem [shape: f32[8,1], index: 5, kind: input, shape index: {}]   ;;  %s3113_s6 = inlined_call_operand.vmem [shape: f32[8,25], index: 6, kind: input, shape index: {}]   ;;  %s3114_s7 = inlined_call_operand.<no memory space> [shape: f32[1,1], index: 7, kind: input, shape index: {}]   ;;  %s3115_s8 = inlined_call_operand.vmem [shape: f32[2,1], index: 8, kind: output, shape index: {}]  }
   0x1   :  { %v2330_v0 = vld [vmem:[%s3107_s0 + $0x4] ss:$8 sps:$4 sm:$0x1f]   ;;  %107 = vmatprep.mubr.bf16.mxu0 %v2451_v1  ;;  %2328 = vset.pattern.permute.xlu0 %v2451_v1  ;;  %v67_v3 = vsel %vm65_vm0, 4294967295, %v2452_v2  ;;  %vm61_vm2 = vcmask 72704   ;;  %v2338_v15 = vld [vmem:[%s3110_s1 + $0x10] sm:$0xff]  }
   0x2   :  { %v2332_v4 = vld [vmem:[%s3107_s0] ss:$8 sps:$4 sm:$0x1f]   ;;  %231 = vmatprep.subr.bf16.mxu1 %v2451_v1  ;;  %2329 = vset.pattern.permute.xlu1 %v2451_v1  ;;  %v68_v5 = vsel %vm66_vm1, %v67_v3, 0  ;;  %v2337_v14 = vld [vmem:[%s3110_s1 + $0x6c] sm:$0xff]   ;;  %v2339_v16 = vld [vmem:[%s3110_s1 + $0x74] sm:$0xff]  }
   0x3   :  { %v36_v6 = vld [vmem:[%s3108_s3] sm:$0xff]  ;;  %v73_v7 = vand.u32 %v2330_v0, %v68_v5  ;;  %v70_v8 = vand.u32 %v2332_v4, %v68_v5  ;;  %v37_v10 = vld [vmem:[%s3108_s3 + $0x8] sm:$0xff]  ;;  %v2340_v17 = vld [vmem:[%s3110_s1 + $0x18] sm:$0xff]   ;;  %vm224_vm3 = vcmask 588800   ;;  %vm2454_vm4 = vmmov 0  }
   0x4   :  { %v2333_v9 = vld [vmem:[%s3109_s2] sm:$0xff]   ;;  %40 = vperm.xlu0 %2328, %v36_v6   ;;  %v2336_v13 = vld [vmem:[%s3110_s1 + $0x8] sm:$0xff]   ;;  %v2346_v23 = vld [vmem:[%s3110_s1 + $0x30] sm:$0xff]   ;;  %vm422_vm5 = vcmask 130048   ;;  %vm1863_vm6 = vcmask 203776   ;;  %vm1875_vm7 = vcmask 0  }
   0x5   :  { %v2334_v11 = vld [vmem:[%s3110_s1] sm:$0xff]   ;;  %75 = vmatprep.subr.bf16.mxu0 %v73_v7  ;;  %v2344_v21 = vld [vmem:[%s3110_s1 + $0x28] sm:$0xff]   ;;  %v2347_v24 = vld [vmem:[%s3110_s1 + $0x94] sm:$0xff]  }
   0x6   :  { %v2335_v12 = vld [vmem:[%s3110_s1 + $0x64] sm:$0xff]   ;;  %76 = vmatpush1.bf16.msra.mxu0 %v70_v8  ;;  %232 = vmatpush1.bf16.msra.mxu1 %v2334_v11  ;;  %v2341_v18 = vld [vmem:[%s3110_s1 + $0x7c] sm:$0xff]   ;;  %v2345_v22 = vld [vmem:[%s3110_s1 + $0x8c] sm:$0xff]  }
   0x7   :  { %378 = vmatprep.subr.bf16.mxu0 %v2451_v1  ;;  %233 = vmatprep.subr.bf16.mxu1 %v2451_v1  ;;  %v2342_v19 = vld [vmem:[%s3110_s1 + $0x20] sm:$0xff]   ;;  %v2348_v25 = vld [vmem:[%s3110_s1 + $0x38] sm:$0xff]   ;;  %v2352_v29 = vld [vmem:[%s3110_s1 + $0x48] sm:$0xff]  }
   0x8   :  { %45 = vperm.xlu0 %2328, %v37_v10   ;;  %v2343_v20 = vld [vmem:[%s3110_s1 + $0x84] sm:$0xff]   ;;  %v2349_v26 = vld [vmem:[%s3110_s1 + $0x9c] sm:$0xff]   ;;  %v2353_v30 = vld [vmem:[%s3110_s1 + $0xac] sm:$0xff]  }
   0x9   :  { %1906 = vmatmul.mubr.msk.bf16.vlgmr.msra.gmra.mrb[0].mxu0 %vm61_vm2, %v2333_v9  ;;  %v2350_v27 = vld [vmem:[%s3110_s1 + $0x40] sm:$0xff]   ;;  %v2354_v31 = vld [vmem:[%s3110_s1 + $0x50] sm:$0xff]   ;;  %v2356_v33 = vld [vmem:[%s3110_s1 + $0x58] sm:$0xff]  }
   0xa   :  { %379 = vmatpush1.bf16.msra.mxu0 %v2335_v12  ;;  %234 = vmatpush1.bf16.msra.mxu1 %v2336_v13  ;;  %v2351_v28 = vld [vmem:[%s3110_s1 + $0xa4] sm:$0xff]   ;;  %v2355_v32 = vld [vmem:[%s3110_s1 + $0xb4] sm:$0xff]   ;;  %v2357_v34 = vld [vmem:[%s3110_s1 + $0xbc] sm:$0xff]  }
   0xb   :  { %380 = vmatprep.subr.bf16.mxu0 %v2451_v1  ;;  %235 = vmatprep.subr.bf16.mxu1 %v2451_v1  ;;  %v2358_v35 = vld [vmem:[%s3110_s1 + $0x60] ss:$0 sps:$4 sm:$0xff]   ;;  %v2359_v36 = vld [vmem:[%s3110_s1 + $0xc4] ss:$0 sps:$4 sm:$0xff]   ;;  %v2360_v55 = vld [vmem:[%s3110_s1 + $0xc8] sm:$0xff]  }
   0xc   :  { %v229_v37 = vsel %vm65_vm0, %v2358_v35, 0  ;;  %v376_v38 = vsel %vm65_vm0, %v2359_v36, 0  ;;  %v2361_v56 = vld [vmem:[%s3110_s1 + $0xd0] sm:$0xff]   ;;  %v2362_v57 = vld [vmem:[%s3110_s1 + $0xd8] sm:$0xff]   ;;  %v2363_v58 = vld [vmem:[%s3110_s1 + $0xe0] sm:$0xff]  }
   0xd   :  { %v2364_v59 = vld [vmem:[%s3110_s1 + $0xe8] sm:$0xff]   ;;  %v2365_v60 = vld [vmem:[%s3110_s1 + $0xf0] sm:$0xff]   ;;  %v2366_v61 = vld [vmem:[%s3110_s1 + $0xf8] sm:$0xff]  }
   0xe   :  { %381 = vmatpush1.bf16.msra.mxu0 %v2337_v14  ;;  %236 = vmatpush1.bf16.msra.mxu1 %v2338_v15  ;;  %v2367_v62 = vld [vmem:[%s3110_s1 + $0x100] sm:$0xff]   ;;  %v2368_v63 = vld [vmem:[%s3110_s1 + $0x108] sm:$0xff]   ;;  %v2369_v0 = vld [vmem:[%s3110_s1 + $0x110] sm:$0xff]  }
   0xf   :  { %382 = vmatprep.subr.bf16.mxu0 %v2451_v1  ;;  %237 = vmatprep.subr.bf16.mxu1 %v2451_v1  ;;  %v2370_v2 = vld [vmem:[%s3110_s1 + $0x118] sm:$0xff]   ;;  %v2371_v3 = vld [vmem:[%s3110_s1 + $0x120] sm:$0xff]   ;;  %v2372_v4 = vld [vmem:[%s3110_s1 + $0x128] ss:$0 sps:$4 sm:$0xff]  }
  0x10   :  { %v611_v5 = vsel %vm65_vm0, %v2372_v4, 0  ;;  %v2373_v6 = vld [vmem:[%s3110_s1 + $0x190] sm:$0xff]   ;;  %v2374_v7 = vld [vmem:[%s3110_s1 + $0x198] sm:$0xff]   ;;  %v2375_v8 = vld [vmem:[%s3110_s1 + $0x1a0] sm:$0xff]  }
  0x11   :  { %v2376_v9 = vld [vmem:[%s3110_s1 + $0x1a8] sm:$0xff]   ;;  %v2377_v10 = vld [vmem:[%s3110_s1 + $0x1b0] sm:$0xff]   ;;  %v2378_v11 = vld [vmem:[%s3110_s1 + $0x1b8] sm:$0xff]  }
  0x12   :  { %383 = vmatpush1.bf16.msra.mxu0 %v2339_v16  ;;  %238 = vmatpush1.bf16.msra.mxu1 %v2340_v17  ;;  %v2379_v12 = vld [vmem:[%s3110_s1 + $0x1c0] sm:$0xff]   ;;  %v2380_v13 = vld [vmem:[%s3110_s1 + $0x1c8] sm:$0xff]   ;;  %v2381_v14 = vld [vmem:[%s3110_s1 + $0x1d0] sm:$0xff]   ;;  %v2453_v16 = vmov 0.0  }
  0x13   :  { %384 = vmatprep.subr.bf16.mxu0 %v2451_v1  ;;  %239 = vmatprep.subr.bf16.mxu1 %v2451_v1  ;;  %v2382_v15 = vld [vmem:[%s3110_s1 + $0x1d8] sm:$0xff]   ;;  %v2383_v17 = vld [vmem:[%s3110_s1 + $0x1e0] sm:$0xff]  }
  0x16   :  { %385 = vmatpush1.bf16.msra.mxu0 %v2341_v18  ;;  %240 = vmatpush1.bf16.msra.mxu1 %v2342_v19  ;;  %v2384_v18 = vld [vmem:[%s3110_s1 + $0x1e8] sm:$0xff]   ;;  %v2385_v19 = vld [vmem:[%s3110_s1 + $0x1f0] ss:$0 sps:$4 sm:$0xff]  }
  0x17   :  { %386 = vmatprep.subr.bf16.mxu0 %v2451_v1  ;;  %241 = vmatprep.subr.bf16.mxu1 %v2451_v1 }
  0x1a   :  { %387 = vmatpush1.bf16.msra.mxu0 %v2343_v20  ;;  %242 = vmatpush1.bf16.msra.mxu1 %v2344_v21  ;;  %v995_v20 = vsel %vm65_vm0, %v2385_v19, 0  ;;  %v2399_v19 = vld [vmem:[%s3110_s1 + $0x1f4] sm:$0xff]  }
  0x1b   :  { %388 = vmatprep.subr.bf16.mxu0 %v2451_v1  ;;  %243 = vmatprep.subr.bf16.mxu1 %v2451_v1 }
  0x1e   :  { %389 = vmatpush1.bf16.msra.mxu0 %v2345_v22  ;;  %244 = vmatpush1.bf16.msra.mxu1 %v2346_v23 }
  0x1f   :  { %390 = vmatprep.subr.bf16.mxu0 %v2451_v1  ;;  %245 = vmatprep.subr.bf16.mxu1 %v2451_v1 }
  0x22   :  { %391 = vmatpush1.bf16.msra.mxu0 %v2347_v24  ;;  %246 = vmatpush1.bf16.msra.mxu1 %v2348_v25 }
  0x23   :  { %392 = vmatprep.subr.bf16.mxu0 %v2451_v1  ;;  %247 = vmatprep.subr.bf16.mxu1 %v2451_v1 }
  0x26   :  { %393 = vmatpush1.bf16.msra.mxu0 %v2349_v26  ;;  %248 = vmatpush1.bf16.msra.mxu1 %v2350_v27 }
  0x27   :  { %394 = vmatprep.subr.bf16.mxu0 %v2451_v1  ;;  %249 = vmatprep.subr.bf16.mxu1 %v2451_v1 }
  0x2a   :  { %395 = vmatpush1.bf16.msra.mxu0 %v2351_v28  ;;  %250 = vmatpush1.bf16.msra.mxu1 %v2352_v29 }
  0x2b   :  { %396 = vmatprep.subr.bf16.mxu0 %v2451_v1  ;;  %251 = vmatprep.subr.bf16.mxu1 %v2451_v1 }
  0x2e   :  { %397 = vmatpush1.bf16.msra.mxu0 %v2353_v30  ;;  %252 = vmatpush1.bf16.msra.mxu1 %v2354_v31  ;;  %v1960_v31 = vld [vmem:[%s3111_s4 + $0x4] sm:$0xf] }
  0x2f   :  { %398 = vmatprep.subr.bf16.mxu0 %v2451_v1  ;;  %253 = vmatprep.subr.bf16.mxu1 %v2451_v1 }
  0x32   :  { %399 = vmatpush1.bf16.msra.mxu0 %v2355_v32  ;;  %254 = vmatpush1.bf16.msra.mxu1 %v2356_v33  ;;  %v272_v32 = vld [vmem:[%s3111_s4] sm:$0xf] }
  0x33   :  { %400 = vmatprep.subr.bf16.mxu0 %v2451_v1  ;;  %255 = vmatprep.subr.bf16.mxu1 %v2451_v1 }
  0x36   :  { %401 = vmatpush1.bf16.msra.mxu0 %v2357_v34  ;;  %256 = vmatpush1.bf16.msra.mxu1 %v229_v37 }
  0x37   :  { %402 = vmatprep.subr.bf16.mxu0 %v2451_v1  ;;  %613 = vmatprep.subr.bf16.mxu1 %v2451_v1 }
  0x3a   :  { %403 = vmatpush1.bf16.msra.mxu0 %v376_v38  ;;  %v2002_v38 = vld [vmem:[%s3111_s4 + $0x8] sm:$0xf] }
  0x3b   :  { %2268 = vmatprep.subr.bf16.mxu0 %v2453_v16 }
  0x83   :  { %v41_v39 = vpop.permute.xlu0 %40 }
  0x87   :  { %v46_v43 = vpop.permute.xlu0 %45 }
  0xdc   :  { %v109_v40 = vpop.f32.mrb[0].mxu0 }
  0xdd   :  { %v110_v41 = vadd.f32 %v109_v40, %v41_v39  ;;  %v111_v42 = vpop.f32.mrb[1].mxu0  ;;  %v2387_v40 = vld [vmem:[%s3110_s1 + $0x134] sm:$0xff]  }
  0xde   :  { %v112_v44 = vadd.f32 %v111_v42, %v41_v39  ;;  %v113_v45 = vpop.f32.mrb[2].mxu0  ;;  %v2386_v39 = vld [vmem:[%s3110_s1 + $0x12c] sm:$0xff]   ;;  %v2389_v42 = vld [vmem:[%s3110_s1 + $0x144] sm:$0xff]  }
  0xdf   :  { %v114_v46 = vadd.f32 %v113_v45, %v46_v43  ;;  %v115_v47 = vpop.f32.mrb[3].mxu0  ;;  %v118_v49 = vmax.f32 %v110_v41, 0.0  ;;  %v2388_v41 = vld [vmem:[%s3110_s1 + $0x13c] sm:$0xff]  }
  0xe0   :  { %v116_v48 = vadd.f32 %v115_v47, %v46_v43  ;;  %v119_v51 = vmax.f32 %v112_v44, 0.0  ;;  %v2390_v43 = vld [vmem:[%s3110_s1 + $0x14c] sm:$0xff]   ;;  %v2391_v44 = vld [vmem:[%s3110_s1 + $0x154] sm:$0xff]   ;;  %v2392_v45 = vld [vmem:[%s3110_s1 + $0x15c] sm:$0xff]  }
  0xe1   :  { %v120_v50 = vmax.f32 %v114_v46, 0.0  ;;  %v2393_v46 = vld [vmem:[%s3110_s1 + $0x164] sm:$0xff]   ;;  %v2394_v47 = vld [vmem:[%s3110_s1 + $0x16c] sm:$0xff]  }
  0xe2   :  { %v121_v52 = vmax.f32 %v116_v48, 0.0  ;;  %v2395_v48 = vld [vmem:[%s3110_s1 + $0x174] sm:$0xff]  }
  0xe3   :  { %v2628_v53 = vpack.c.bf16 %v120_v50, %v118_v49  ;;  %v2396_v49 = vld [vmem:[%s3110_s1 + $0x17c] sm:$0xff]   ;;  %v2397_v50 = vld [vmem:[%s3110_s1 + $0x184] sm:$0xff]  }
  0xe4   :  { %v2630_v54 = vpack.c.bf16 %v121_v52, %v119_v51  ;;  %v2398_v51 = vld [vmem:[%s3110_s1 + $0x18c] ss:$0 sps:$4 sm:$0xff]  }
  0xe6   :  { %1920 = vmatprep.mubr.msk.bf16.mxu1 %vm224_vm3, %v2630_v54  ;;  %1959 = vmatprep.mubr.msk.bf16.mxu0 %vm224_vm3, %v2630_v54 }
  0xe7   :  { %264 = vmatmul.mubr.bf16.vlgmr.msra.gmra.mrb[0].mxu1 %v2628_v53  ;;  %411 = vmatmul.mubr.bf16.vlgmr.msra.gmra.mrb[4].mxu0 %v2628_v53 }
  0xe8   :  { %614 = vmatpush1.bf16.msra.mxu1 %v2360_v55  ;;  %2001 = vmatprep.mubr.msk.bf16.mxu1 %vm224_vm3, %v2630_v54 }
  0xe9   :  { %615 = vmatprep.subr.bf16.mxu1 %v2451_v1  ;;  %2270 = vmatprep.mubr.msk.bf16.mxu0 %vm2454_vm4, %v2453_v16 }
  0xec   :  { %616 = vmatpush1.bf16.msra.mxu1 %v2361_v56 }
  0xed   :  { %617 = vmatprep.subr.bf16.mxu1 %v2451_v1 }
  0xf0   :  { %618 = vmatpush1.bf16.msra.mxu1 %v2362_v57  ;;  %v803_v57 = vsel %vm65_vm0, %v2398_v51, 0  ;;  %v2414_v51 = vld [vmem:[%s3110_s1 + $0x268] sm:$0xff]  }
  0xf1   :  { %619 = vmatprep.subr.bf16.mxu1 %v2451_v1 }
  0xf4   :  { %620 = vmatpush1.bf16.msra.mxu1 %v2363_v58 }
  0xf5   :  { %621 = vmatprep.subr.bf16.mxu1 %v2451_v1 }
  0xf8   :  { %622 = vmatpush1.bf16.msra.mxu1 %v2364_v59 }
  0xf9   :  { %623 = vmatprep.subr.bf16.mxu1 %v2451_v1 }
  0xfc   :  { %624 = vmatpush1.bf16.msra.mxu1 %v2365_v60 }
  0xfd   :  { %625 = vmatprep.subr.bf16.mxu1 %v2451_v1 }
 0x100   :  { %626 = vmatpush1.bf16.msra.mxu1 %v2366_v61 }
 0x101   :  { %627 = vmatprep.subr.bf16.mxu1 %v2451_v1 }
 0x104   :  { %628 = vmatpush1.bf16.msra.mxu1 %v2367_v62 }
 0x105   :  { %629 = vmatprep.subr.bf16.mxu1 %v2451_v1 }
 0x108   :  { %630 = vmatpush1.bf16.msra.mxu1 %v2368_v63 }
 0x109   :  { %631 = vmatprep.subr.bf16.mxu1 %v2451_v1 }
 0x10c   :  { %632 = vmatpush1.bf16.msra.mxu1 %v2369_v0 }
 0x10d   :  { %633 = vmatprep.subr.bf16.mxu1 %v2451_v1 }
 0x110   :  { %634 = vmatpush1.bf16.msra.mxu1 %v2370_v2 }
 0x111   :  { %635 = vmatprep.subr.bf16.mxu1 %v2451_v1 }
 0x114   :  { %636 = vmatpush1.bf16.msra.mxu1 %v2371_v3 }
 0x115   :  { %637 = vmatprep.subr.bf16.mxu1 %v2451_v1 }
 0x118   :  { %638 = vmatpush1.bf16.msra.mxu1 %v611_v5 }
 0x119   :  { %997 = vmatprep.subr.bf16.mxu1 %v2451_v1 }
 0x11b   :  { %646 = vmatmul.mubr.bf16.vlgmr.msra.gmra.mrb[4].mxu1 %v2628_v53 }
 0x11c   :  { %998 = vmatpush1.bf16.msra.mxu1 %v2373_v6  ;;  %2083 = vmatprep.mubr.msk.bf16.mxu1 %vm224_vm3, %v2630_v54 }
 0x11d   :  { %999 = vmatprep.subr.bf16.mxu1 %v2451_v1 }
 0x120   :  { %1000 = vmatpush1.bf16.msra.mxu1 %v2374_v7 }
 0x121   :  { %1001 = vmatprep.subr.bf16.mxu1 %v2451_v1 }
 0x124   :  { %1002 = vmatpush1.bf16.msra.mxu1 %v2375_v8 }
 0x125   :  { %1003 = vmatprep.subr.bf16.mxu1 %v2451_v1 }
 0x128   :  { %1004 = vmatpush1.bf16.msra.mxu1 %v2376_v9 }
 0x129   :  { %1005 = vmatprep.subr.bf16.mxu1 %v2451_v1 }
 0x12c   :  { %1006 = vmatpush1.bf16.msra.mxu1 %v2377_v10 }
 0x12d   :  { %1007 = vmatprep.subr.bf16.mxu1 %v2451_v1 }
 0x130   :  { %1008 = vmatpush1.bf16.msra.mxu1 %v2378_v11 }
 0x131   :  { %1009 = vmatprep.subr.bf16.mxu1 %v2451_v1 }
 0x134   :  { %1010 = vmatpush1.bf16.msra.mxu1 %v2379_v12 }
 0x135   :  { %1011 = vmatprep.subr.bf16.mxu1 %v2451_v1 }
 0x138   :  { %1012 = vmatpush1.bf16.msra.mxu1 %v2380_v13 }
 0x139   :  { %1013 = vmatprep.subr.bf16.mxu1 %v2451_v1 }
 0x13c   :  { %1014 = vmatpush1.bf16.msra.mxu1 %v2381_v14 }
 0x13d   :  { %1015 = vmatprep.subr.bf16.mxu1 %v2451_v1 }
 0x140   :  { %1016 = vmatpush1.bf16.msra.mxu1 %v2382_v15 }
 0x141   :  { %1017 = vmatprep.subr.bf16.mxu1 %v2451_v1 }
 0x144   :  { %1018 = vmatpush1.bf16.msra.mxu1 %v2383_v17  ;;  %v2043_v17 = vld [vmem:[%s3111_s4 + $0xc] sm:$0xf] }
 0x145   :  { %1019 = vmatprep.subr.bf16.mxu1 %v2451_v1 }
 0x148   :  { %1020 = vmatpush1.bf16.msra.mxu1 %v2384_v18  ;;  %v2084_v18 = vld [vmem:[%s3111_s4 + $0x10] sm:$0xf] }
 0x149   :  { %1021 = vmatprep.subr.bf16.mxu1 %v2451_v1 }
 0x14c   :  { %1022 = vmatpush1.bf16.msra.mxu1 %v995_v20  ;;  %v2400_v20 = vld [vmem:[%s3110_s1 + $0x1fc] sm:$0xff]  }
 0x14d   :  { %2298 = vmatprep.subr.bf16.mxu1 %v2453_v16 }
 0x14f   :  { %1030 = vmatmul.mubr.bf16.vlgmr.msra.gmra.mrb[8].mxu1 %v2628_v53 }
 0x150   :  { %2300 = vmatprep.mubr.msk.bf16.mxu1 %vm2454_vm4, %v2453_v16 }
 0x1ba   :  { %v265_v21 = vpop.f32.mrb[0].mxu1  ;;  %v412_v22 = vpop.f32.mrb[4].mxu0 }
 0x1bb   :  { %v267_v23 = vpop.f32.mrb[1].mxu1  ;;  %v414_v24 = vpop.f32.mrb[5].mxu0 }
 0x1bc   :  { %v268_v25 = vpop.f32.mrb[2].mxu1  ;;  %v415_v26 = vpop.f32.mrb[6].mxu0  ;;  %v2403_v23 = vld [vmem:[%s3110_s1 + $0x214] sm:$0xff]   ;;  %v2404_v24 = vld [vmem:[%s3110_s1 + $0x21c] sm:$0xff]  }
 0x1bd   :  { %v273_v27 = vpack.c.bf16 %v268_v25, %v265_v21  ;;  %v421_v28 = vpack.c.bf16 %v415_v26, %v412_v22  ;;  %v270_v29 = vpop.f32.mrb[3].mxu1  ;;  %v417_v30 = vpop.f32.mrb[7].mxu0  ;;  %v2401_v21 = vld [vmem:[%s3110_s1 + $0x204] sm:$0xff]   ;;  %v2402_v22 = vld [vmem:[%s3110_s1 + $0x20c] sm:$0xff]  }
 0x1be   :  { %v2405_v25 = vld [vmem:[%s3110_s1 + $0x224] sm:$0xff]   ;;  %v2406_v26 = vld [vmem:[%s3110_s1 + $0x22c] sm:$0xff]  }
 0x1bf   :  { %2269 = vmatpush3.bf16.msra.mxu0 %v421_v28  ;;  %v2408_v28 = vld [vmem:[%s3110_s1 + $0x23c] sm:$0xff]   ;;  %v2409_v29 = vld [vmem:[%s3110_s1 + $0x244] sm:$0xff]   ;;  %v2410_v30 = vld [vmem:[%s3110_s1 + $0x24c] sm:$0xff]  }
 0x1c0   :  { %2274 = vmatprep.subr.bf16.mxu0 %v2453_v16 }
 0x1c2   :  { %2271 = vmatmul.mubr.msk.bf16.vlgmr.msra.gmra.mrb[8].mxu0 %vm422_vm5, %v1960_v31  ;;  %v2411_v31 = vld [vmem:[%s3110_s1 + $0x254] ss:$0 sps:$4 sm:$0xff]  }
 0x1c3   :  { %2275 = vmatpush3.bf16.msra.mxu0 %v273_v27  ;;  %2276 = vmatprep.mubr.msk.bf16.mxu0 %vm2454_vm4, %v2453_v16  ;;  %v2407_v27 = vld [vmem:[%s3110_s1 + $0x234] sm:$0xff]  }
 0x1c4   :  { %2280 = vmatprep.subr.bf16.mxu0 %v2453_v16 }
 0x1ca   :  { %2277 = vmatmul.mubr.msk.bf16.vlgmr.msra.gmra.mrb[12].mxu0 %vm422_vm5, %v272_v32  ;;  %v1187_v32 = vsel %vm65_vm0, %v2411_v31, 0 }
 0x1cb   :  { %2282 = vmatprep.mubr.msk.bf16.mxu0 %vm2454_vm4, %v2453_v16 }
 0x1ee   :  { %v647_v33 = vpop.f32.mrb[4].mxu1 }
 0x1ef   :  { %v649_v34 = vpop.f32.mrb[5].mxu1 }
 0x1f0   :  { %v650_v35 = vpop.f32.mrb[6].mxu1 }
 0x1f1   :  { %v656_v36 = vpack.c.bf16 %v650_v35, %v647_v33  ;;  %v652_v37 = vpop.f32.mrb[7].mxu1 }
 0x1f3   :  { %2281 = vmatpush3.bf16.msra.mxu0 %v656_v36 }
 0x1f4   :  { %805 = vmatprep.subr.bf16.mxu0 %v2451_v1 }
 0x1f6   :  { %2283 = vmatmul.mubr.msk.bf16.vlgmr.msra.gmra.mrb[16].mxu0 %vm422_vm5, %v2002_v38 }
 0x1f7   :  { %806 = vmatpush1.bf16.msra.mxu0 %v2386_v39  ;;  %2042 = vmatprep.mubr.msk.bf16.mxu0 %vm224_vm3, %v2630_v54 }
 0x1f8   :  { %807 = vmatprep.subr.bf16.mxu0 %v2451_v1 }
 0x1fb   :  { %808 = vmatpush1.bf16.msra.mxu0 %v2387_v40 }
 0x1fc   :  { %809 = vmatprep.subr.bf16.mxu0 %v2451_v1 }
 0x1ff   :  { %810 = vmatpush1.bf16.msra.mxu0 %v2388_v41 }
 0x200   :  { %811 = vmatprep.subr.bf16.mxu0 %v2451_v1 }
 0x203   :  { %812 = vmatpush1.bf16.msra.mxu0 %v2389_v42 }
 0x204   :  { %813 = vmatprep.subr.bf16.mxu0 %v2451_v1 }
 0x207   :  { %814 = vmatpush1.bf16.msra.mxu0 %v2390_v43 }
 0x208   :  { %815 = vmatprep.subr.bf16.mxu0 %v2451_v1 }
 0x20b   :  { %816 = vmatpush1.bf16.msra.mxu0 %v2391_v44 }
 0x20c   :  { %817 = vmatprep.subr.bf16.mxu0 %v2451_v1 }
 0x20f   :  { %818 = vmatpush1.bf16.msra.mxu0 %v2392_v45 }
 0x210   :  { %819 = vmatprep.subr.bf16.mxu0 %v2451_v1 }
 0x213   :  { %820 = vmatpush1.bf16.msra.mxu0 %v2393_v46 }
 0x214   :  { %821 = vmatprep.subr.bf16.mxu0 %v2451_v1 }
 0x217   :  { %822 = vmatpush1.bf16.msra.mxu0 %v2394_v47 }
 0x218   :  { %823 = vmatprep.subr.bf16.mxu0 %v2451_v1 }
 0x21b   :  { %824 = vmatpush1.bf16.msra.mxu0 %v2395_v48  ;;  %v2125_v48 = vld [vmem:[%s3111_s4 + $0x14] sm:$0xf] }
 0x21c   :  { %825 = vmatprep.subr.bf16.mxu0 %v2451_v1 }
 0x21f   :  { %826 = vmatpush1.bf16.msra.mxu0 %v2396_v49  ;;  %v2412_v49 = vld [vmem:[%s3110_s1 + $0x258] sm:$0xff]  }
 0x220   :  { %827 = vmatprep.subr.bf16.mxu0 %v2451_v1 }
 0x222   :  { %v1031_v52 = vpop.f32.mrb[8].mxu1 }
 0x223   :  { %828 = vmatpush1.bf16.msra.mxu0 %v2397_v50  ;;  %v1033_v55 = vpop.f32.mrb[9].mxu1  ;;  %v2413_v50 = vld [vmem:[%s3110_s1 + $0x260] sm:$0xff]  }
 0x224   :  { %v1034_v56 = vpop.f32.mrb[10].mxu1  ;;  %829 = vmatprep.subr.bf16.mxu0 %v2451_v1  ;;  %v2416_v55 = vld [vmem:[%s3110_s1 + $0x278] sm:$0xff]  }
 0x225   :  { %v1040_v58 = vpack.c.bf16 %v1034_v56, %v1031_v52  ;;  %v1036_v59 = vpop.f32.mrb[11].mxu1  ;;  %v2415_v52 = vld [vmem:[%s3110_s1 + $0x270] sm:$0xff]   ;;  %v2417_v56 = vld [vmem:[%s3110_s1 + $0x280] sm:$0xff]  }
 0x226   :  { %v2420_v59 = vld [vmem:[%s3110_s1 + $0x298] sm:$0xff]  }
 0x227   :  { %830 = vmatpush1.bf16.msra.mxu0 %v803_v57  ;;  %v2418_v57 = vld [vmem:[%s3110_s1 + $0x288] sm:$0xff]  }
 0x228   :  { %2286 = vmatprep.subr.bf16.mxu0 %v2453_v16 }
 0x22a   :  { %838 = vmatmul.mubr.bf16.vlgmr.msra.gmra.mrb[20].mxu0 %v2628_v53 }
 0x22b   :  { %2288 = vmatprep.mubr.msk.bf16.mxu0 %vm2454_vm4, %v2453_v16 }
 0x295   :  { %v460_v60 = vpop.f32.mrb[8].mxu0 }
 0x296   :  { %v2272_v61 = vpop.f32.mrb[9].mxu0 }
 0x297   :  { %v463_v62 = vpop.f32.mrb[10].mxu0  ;;  %v2422_v61 = vld [vmem:[%s3110_s1 + $0x2a8] sm:$0xff]  }
 0x298   :  { %v2273_v63 = vpop.f32.mrb[11].mxu0  ;;  %v2423_v62 = vld [vmem:[%s3110_s1 + $0x2b0] sm:$0xff]  }
 0x299   :  { %v2424_v63 = vld [vmem:[%s3110_s1 + $0x2b8] ss:$0 sps:$4 sm:$0xff]  }
 0x29d   :  { %v503_v0 = vpop.f32.mrb[12].mxu0 }
 0x29e   :  { %v504_v2 = vadd.f32 %v503_v0, %v460_v60  ;;  %v2278_v3 = vpop.f32.mrb[13].mxu0  ;;  %v2421_v60 = vld [vmem:[%s3110_s1 + $0x2a0] sm:$0xff]   ;;  %v1379_v0 = vsel %vm65_vm0, %v2424_v63, 0 }
 0x29f   :  { %v506_v4 = vpop.f32.mrb[14].mxu0  ;;  %v2248_v63 = vld [vmem:[%s3111_s4 + $0x20] sm:$0xf] }
 0x2a0   :  { %v2279_v5 = vpop.f32.mrb[15].mxu0 }
 0x2c9   :  { %v694_v6 = vpop.f32.mrb[16].mxu0 }
 0x2ca   :  { %v700_v7 = vadd.f32 %v694_v6, %v504_v2  ;;  %v2284_v8 = vpop.f32.mrb[17].mxu0 }
 0x2cb   :  { %v697_v9 = vpop.f32.mrb[18].mxu0 }
 0x2cc   :  { %v2285_v10 = vpop.f32.mrb[19].mxu0 }
 0x2fd   :  { %v839_v11 = vpop.f32.mrb[20].mxu0 }
 0x2fe   :  { %v841_v12 = vpop.f32.mrb[21].mxu0 }
 0x2ff   :  { %v842_v13 = vpop.f32.mrb[22].mxu0  ;;  %v2166_v12 = vld [vmem:[%s3111_s4 + $0x18] sm:$0xf] }
 0x300   :  { %v848_v14 = vpack.c.bf16 %v842_v13, %v839_v11  ;;  %v844_v15 = vpop.f32.mrb[23].mxu0  ;;  %v2425_v13 = vld [vmem:[%s3110_s1 + $0x2bc] sm:$0xff]  }
 0x301   :  { %v2427_v15 = vld [vmem:[%s3110_s1 + $0x2cc] sm:$0xff]  }
 0x302   :  { %2287 = vmatpush3.bf16.msra.mxu0 %v848_v14  ;;  %v2426_v14 = vld [vmem:[%s3110_s1 + $0x2c4] sm:$0xff]  }
 0x303   :  { %2292 = vmatprep.subr.bf16.mxu0 %v2453_v16 }
 0x305   :  { %2289 = vmatmul.mubr.msk.bf16.vlgmr.msra.gmra.mrb[24].mxu0 %vm422_vm5, %v2043_v17  ;;  %v2428_v17 = vld [vmem:[%s3110_s1 + $0x2d4] sm:$0xff]  }
 0x306   :  { %2293 = vmatpush3.bf16.msra.mxu0 %v1040_v58  ;;  %2294 = vmatprep.mubr.msk.bf16.mxu0 %vm2454_vm4, %v2453_v16  ;;  %v2419_v58 = vld [vmem:[%s3110_s1 + $0x290] sm:$0xff]  }
 0x307   :  { %1189 = vmatprep.subr.bf16.mxu0 %v2451_v1 }
 0x30d   :  { %2295 = vmatmul.mubr.msk.bf16.vlgmr.msra.gmra.mrb[28].mxu0 %vm422_vm5, %v2084_v18  ;;  %v2429_v18 = vld [vmem:[%s3110_s1 + $0x2dc] sm:$0xff]  }
 0x30e   :  { %1190 = vmatpush1.bf16.msra.mxu0 %v2399_v19  ;;  %2124 = vmatprep.mubr.msk.bf16.mxu0 %vm224_vm3, %v2630_v54  ;;  %v2430_v19 = vld [vmem:[%s3110_s1 + $0x2e4] sm:$0xff]  }
 0x30f   :  { %1191 = vmatprep.subr.bf16.mxu0 %v2451_v1 }
 0x312   :  { %1192 = vmatpush1.bf16.msra.mxu0 %v2400_v20  ;;  %v2431_v20 = vld [vmem:[%s3110_s1 + $0x2ec] sm:$0xff]  }
 0x313   :  { %1193 = vmatprep.subr.bf16.mxu0 %v2451_v1 }
 0x316   :  { %1194 = vmatpush1.bf16.msra.mxu0 %v2401_v21  ;;  %v2432_v21 = vld [vmem:[%s3110_s1 + $0x2f4] sm:$0xff]  }
 0x317   :  { %1195 = vmatprep.subr.bf16.mxu0 %v2451_v1 }
 0x31a   :  { %1196 = vmatpush1.bf16.msra.mxu0 %v2402_v22  ;;  %v2433_v22 = vld [vmem:[%s3110_s1 + $0x2fc] sm:$0xff]  }
 0x31b   :  { %1197 = vmatprep.subr.bf16.mxu0 %v2451_v1 }
 0x31e   :  { %1198 = vmatpush1.bf16.msra.mxu0 %v2403_v23  ;;  %v2434_v23 = vld [vmem:[%s3110_s1 + $0x304] sm:$0xff]  }
 0x31f   :  { %1199 = vmatprep.subr.bf16.mxu0 %v2451_v1 }
 0x322   :  { %1200 = vmatpush1.bf16.msra.mxu0 %v2404_v24  ;;  %v2435_v24 = vld [vmem:[%s3110_s1 + $0x30c] sm:$0xff]  }
 0x323   :  { %1201 = vmatprep.subr.bf16.mxu0 %v2451_v1 }
 0x326   :  { %1202 = vmatpush1.bf16.msra.mxu0 %v2405_v25  ;;  %v2436_v25 = vld [vmem:[%s3110_s1 + $0x314] sm:$0xff]  }
 0x327   :  { %1203 = vmatprep.subr.bf16.mxu0 %v2451_v1 }
 0x32a   :  { %1204 = vmatpush1.bf16.msra.mxu0 %v2406_v26  ;;  %v2437_v26 = vld [vmem:[%s3110_s1 + $0x31c] ss:$0 sps:$4 sm:$0xff]  }
 0x32b   :  { %1205 = vmatprep.subr.bf16.mxu0 %v2451_v1 }
 0x32e   :  { %1206 = vmatpush1.bf16.msra.mxu0 %v2407_v27  ;;  %v1571_v27 = vsel %vm65_vm0, %v2437_v26, 0 }
 0x32f   :  { %1207 = vmatprep.subr.bf16.mxu0 %v2451_v1 }
 0x332   :  { %1208 = vmatpush1.bf16.msra.mxu0 %v2408_v28 }
 0x333   :  { %1209 = vmatprep.subr.bf16.mxu0 %v2451_v1 }
 0x336   :  { %1210 = vmatpush1.bf16.msra.mxu0 %v2409_v29 }
 0x337   :  { %1211 = vmatprep.subr.bf16.mxu0 %v2451_v1 }
 0x33a   :  { %1212 = vmatpush1.bf16.msra.mxu0 %v2410_v30 }
 0x33b   :  { %1213 = vmatprep.subr.bf16.mxu0 %v2451_v1 }
 0x33e   :  { %1214 = vmatpush1.bf16.msra.mxu0 %v1187_v32 }
 0x33f   :  { %2304 = vmatprep.subr.bf16.mxu0 %v2453_v16 }
 0x341   :  { %1222 = vmatmul.mubr.bf16.vlgmr.msra.gmra.mrb[32].mxu0 %v2628_v53 }
 0x342   :  { %2306 = vmatprep.mubr.msk.bf16.mxu0 %vm2454_vm4, %v2453_v16 }
 0x3d8   :  { %v886_v33 = vpop.f32.mrb[24].mxu0 }
 0x3d9   :  { %v892_v34 = vadd.f32 %v886_v33, %v700_v7  ;;  %v2290_v35 = vpop.f32.mrb[25].mxu0 }
 0x3da   :  { %v889_v36 = vpop.f32.mrb[26].mxu0 }
 0x3db   :  { %v2291_v37 = vpop.f32.mrb[27].mxu0 }
 0x3e0   :  { %v1078_v38 = vpop.f32.mrb[28].mxu0 }
 0x3e1   :  { %v1084_v39 = vadd.f32 %v1078_v38, %v892_v34  ;;  %v2296_v40 = vpop.f32.mrb[29].mxu0  ;;  %v2207_v38 = vld [vmem:[%s3111_s4 + $0x1c] sm:$0xf]  ;;  %s2456_s4 = smov 103  }
 0x3e2   :  { %v1081_v41 = vpop.f32.mrb[30].mxu0  ;;  %v2440_v40 = vld [vmem:[%s3110_s1 + $0x330] sm:$0xff]  }
 0x3e3   :  { %v2297_v42 = vpop.f32.mrb[31].mxu0  ;;  %v2441_v41 = vld [vmem:[%s3110_s1 + $0x338] sm:$0xff]  }
 0x3e4   :  { %v2443_v42 = vld [vmem:[%s3110_s1 + $0x348] sm:$0xff]  }
 0x414   :  { %v1223_v43 = vpop.f32.mrb[32].mxu0 }
 0x415   :  { %v1225_v44 = vpop.f32.mrb[33].mxu0 }
 0x416   :  { %v1226_v45 = vpop.f32.mrb[34].mxu0  ;;  %v2445_v44 = vld [vmem:[%s3110_s1 + $0x358] sm:$0xff]  }
 0x417   :  { %v1232_v46 = vpack.c.bf16 %v1226_v45, %v1223_v43  ;;  %v1228_v47 = vpop.f32.mrb[35].mxu0  ;;  %v2444_v43 = vld [vmem:[%s3110_s1 + $0x350] sm:$0xff]   ;;  %v2446_v45 = vld [vmem:[%s3110_s1 + $0x360] sm:$0xff]  }
 0x418   :  { %v2448_v47 = vld [vmem:[%s3110_s1 + $0x370] sm:$0xff]  }
 0x419   :  { %2299 = vmatpush3.bf16.msra.mxu1 %v1232_v46  ;;  %v2447_v46 = vld [vmem:[%s3110_s1 + $0x368] sm:$0xff]  }
 0x41a   :  { %1381 = vmatprep.subr.bf16.mxu1 %v2451_v1 }
 0x41c   :  { %2301 = vmatmul.mubr.msk.bf16.vlgmr.msra.gmra.mrb[12].mxu1 %vm422_vm5, %v2125_v48  ;;  %v2449_v48 = vld [vmem:[%s3110_s1 + $0x378] sm:$0xff]  }
 0x41d   :  { %1382 = vmatpush1.bf16.msra.mxu1 %v2412_v49  ;;  %2165 = vmatprep.mubr.msk.bf16.mxu1 %vm224_vm3, %v2630_v54  ;;  %v2450_v49 = vld [vmem:[%s3110_s1 + $0x380] ss:$0 sps:$4 sm:$0xff]  }
 0x41e   :  { %1383 = vmatprep.subr.bf16.mxu1 %v2451_v1 }
 0x421   :  { %1384 = vmatpush1.bf16.msra.mxu1 %v2413_v50  ;;  %v1763_v50 = vsel %vm65_vm0, %v2450_v49, 0 }
 0x422   :  { %1385 = vmatprep.subr.bf16.mxu1 %v2451_v1 }
 0x425   :  { %1386 = vmatpush1.bf16.msra.mxu1 %v2414_v51  ;;  %v1853_v51 = vld [vmem:[%s3112_s5] sm:$0xff] }
 0x426   :  { %1387 = vmatprep.subr.bf16.mxu1 %v2451_v1  ;;  %1856 = vperm.xlu1 %2329, %v1853_v51  }
 0x429   :  { %1388 = vmatpush1.bf16.msra.mxu1 %v2415_v52  ;;  %v1877_v52 = vld [vmem:[%s3113_s6] sm:$0xff] }
 0x42a   :  { %1389 = vmatprep.subr.bf16.mxu1 %v2451_v1  ;;  %1879 = vrot.lane.b32.xlu1 %v1877_v52, %s2455_s18 }
 0x42d   :  { %1390 = vmatpush1.bf16.msra.mxu1 %v2416_v55 }
 0x42e   :  { %1391 = vmatprep.subr.bf16.mxu1 %v2451_v1 }
 0x431   :  { %1392 = vmatpush1.bf16.msra.mxu1 %v2417_v56 }
 0x432   :  { %1393 = vmatprep.subr.bf16.mxu1 %v2451_v1 }
 0x435   :  { %1394 = vmatpush1.bf16.msra.mxu1 %v2418_v57 }
 0x436   :  { %1395 = vmatprep.subr.bf16.mxu1 %v2451_v1 }
 0x439   :  { %1396 = vmatpush1.bf16.msra.mxu1 %v2419_v58 }
 0x43a   :  { %1397 = vmatprep.subr.bf16.mxu1 %v2451_v1 }
 0x43d   :  { %1398 = vmatpush1.bf16.msra.mxu1 %v2420_v59 }
 0x43e   :  { %1399 = vmatprep.subr.bf16.mxu1 %v2451_v1 }
 0x441   :  { %1400 = vmatpush1.bf16.msra.mxu1 %v2421_v60 }
 0x442   :  { %1401 = vmatprep.subr.bf16.mxu1 %v2451_v1 }
 0x445   :  { %1402 = vmatpush1.bf16.msra.mxu1 %v2422_v61 }
 0x446   :  { %1403 = vmatprep.subr.bf16.mxu1 %v2451_v1 }
 0x449   :  { %1404 = vmatpush1.bf16.msra.mxu1 %v2423_v62 }
 0x44a   :  { %1405 = vmatprep.subr.bf16.mxu1 %v2451_v1 }
 0x44d   :  { %1406 = vmatpush1.bf16.msra.mxu1 %v1379_v0 }
 0x44e   :  { %2310 = vmatprep.subr.bf16.mxu1 %v2453_v16 }
 0x450   :  { %1414 = vmatmul.mubr.bf16.vlgmr.msra.gmra.mrb[16].mxu1 %v2628_v53 }
 0x451   :  { %2312 = vmatprep.mubr.msk.bf16.mxu1 %vm2454_vm4, %v2453_v16 }
 0x4a5   :  { %v1857_v0 = vpop.permute.xlu1 %1856 }
 0x4ef   :  { %v1270_v2 = vpop.f32.mrb[12].mxu1 }
 0x4f0   :  { %v1276_v3 = vadd.f32 %v1270_v2, %v1084_v39  ;;  %v2302_v4 = vpop.f32.mrb[13].mxu1  ;;  %v2438_v39 = vld [vmem:[%s3110_s1 + $0x320] sm:$0xff]   ;;  %v13_v2 = vstv %s3114_s7 }
 0x4f1   :  { %v1273_v5 = vpop.f32.mrb[14].mxu1  ;;  %14 = vst [vmem:[#allocation2] sm:$0x1] %v13_v2 }
 0x4f2   :  { %v2303_v6 = vpop.f32.mrb[15].mxu1 }
 0x523   :  { %v1415_v7 = vpop.f32.mrb[16].mxu1 }
 0x524   :  { %v1417_v8 = vpop.f32.mrb[17].mxu1 }
 0x525   :  { %v1418_v9 = vpop.f32.mrb[18].mxu1 }
 0x526   :  { %v1424_v10 = vpack.c.bf16 %v1418_v9, %v1415_v7  ;;  %v1420_v11 = vpop.f32.mrb[19].mxu1  ;;  %v1880_v9 = vpop.permute.xlu1 %1879 }
 0x528   :  { %2305 = vmatpush3.bf16.msra.mxu0 %v1424_v10 }
 0x529   :  { %1573 = vmatprep.subr.bf16.mxu0 %v2451_v1 }
 0x52b   :  { %2307 = vmatmul.mubr.msk.bf16.vlgmr.msra.gmra.mrb[36].mxu0 %vm422_vm5, %v2166_v12 }
 0x52c   :  { %1574 = vmatpush1.bf16.msra.mxu0 %v2425_v13  ;;  %2206 = vmatprep.mubr.msk.bf16.mxu0 %vm224_vm3, %v2630_v54 }
 0x52d   :  { %1575 = vmatprep.subr.bf16.mxu0 %v2451_v1 }
 0x530   :  { %1576 = vmatpush1.bf16.msra.mxu0 %v2426_v14 }
 0x531   :  { %1577 = vmatprep.subr.bf16.mxu0 %v2451_v1 }
 0x534   :  { %1578 = vmatpush1.bf16.msra.mxu0 %v2427_v15 }
 0x535   :  { %1579 = vmatprep.subr.bf16.mxu0 %v2451_v1 }
 0x538   :  { %1580 = vmatpush1.bf16.msra.mxu0 %v2428_v17 }
 0x539   :  { %1581 = vmatprep.subr.bf16.mxu0 %v2451_v1 }
 0x53c   :  { %1582 = vmatpush1.bf16.msra.mxu0 %v2429_v18 }
 0x53d   :  { %1583 = vmatprep.subr.bf16.mxu0 %v2451_v1 }
 0x540   :  { %1584 = vmatpush1.bf16.msra.mxu0 %v2430_v19 }
 0x541   :  { %1585 = vmatprep.subr.bf16.mxu0 %v2451_v1 }
 0x544   :  { %1586 = vmatpush1.bf16.msra.mxu0 %v2431_v20 }
 0x545   :  { %1587 = vmatprep.subr.bf16.mxu0 %v2451_v1 }
 0x548   :  { %1588 = vmatpush1.bf16.msra.mxu0 %v2432_v21 }
 0x549   :  { %1589 = vmatprep.subr.bf16.mxu0 %v2451_v1 }
 0x54c   :  { %1590 = vmatpush1.bf16.msra.mxu0 %v2433_v22 }
 0x54d   :  { %1591 = vmatprep.subr.bf16.mxu0 %v2451_v1 }
 0x550   :  { %1592 = vmatpush1.bf16.msra.mxu0 %v2434_v23  ;;  %v1873_v23 = vld [vmem:[#allocation2] sm:$0x1] }
 0x551   :  { %1593 = vmatprep.subr.bf16.mxu0 %v2451_v1 }
 0x554   :  { %1594 = vmatpush1.bf16.msra.mxu0 %v2435_v24 }
 0x555   :  { %1595 = vmatprep.subr.bf16.mxu0 %v2451_v1 }
 0x558   :  { %1596 = vmatpush1.bf16.msra.mxu0 %v2436_v25 }
 0x559   :  { %1597 = vmatprep.subr.bf16.mxu0 %v2451_v1 }
 0x55c   :  { %1598 = vmatpush1.bf16.msra.mxu0 %v1571_v27 }
 0x55d   :  { %2316 = vmatprep.subr.bf16.mxu0 %v2453_v16 }
 0x55f   :  { %1606 = vmatmul.mubr.bf16.vlgmr.msra.gmra.mrb[40].mxu0 %v2628_v53 }
 0x560   :  { %2318 = vmatprep.mubr.msk.bf16.mxu0 %vm2454_vm4, %v2453_v16  ;;  %v2439_v16 = vld [vmem:[%s3110_s1 + $0x328] sm:$0xff]  }
 0x5fe   :  { %v1462_v28 = vpop.f32.mrb[36].mxu0 }
 0x5ff   :  { %v1468_v29 = vadd.f32 %v1462_v28, %v1276_v3  ;;  %v2308_v30 = vpop.f32.mrb[37].mxu0 }
 0x600   :  { %v1465_v31 = vpop.f32.mrb[38].mxu0 }
 0x601   :  { %v2309_v32 = vpop.f32.mrb[39].mxu0 }
 0x602   :  { %v1896_v32 = vld [vmem:[#allocation2] sm:$0x1] }
 0x632   :  { %v1607_v33 = vpop.f32.mrb[40].mxu0 }
 0x633   :  { %v1609_v34 = vpop.f32.mrb[41].mxu0 }
 0x634   :  { %v1610_v35 = vpop.f32.mrb[42].mxu0 }
 0x635   :  { %v1616_v36 = vpack.c.bf16 %v1610_v35, %v1607_v33  ;;  %v1612_v37 = vpop.f32.mrb[43].mxu0 }
 0x637   :  { %2311 = vmatpush3.bf16.msra.mxu1 %v1616_v36 }
 0x638   :  { %1765 = vmatprep.subr.bf16.mxu1 %v2451_v1 }
 0x63a   :  { %2313 = vmatmul.mubr.msk.bf16.vlgmr.msra.gmra.mrb[20].mxu1 %vm422_vm5, %v2207_v38 }
 0x63b   :  { %1766 = vmatpush1.bf16.msra.mxu1 %v2438_v39  ;;  %2247 = vmatprep.mubr.msk.bf16.mxu1 %vm224_vm3, %v2630_v54  ;;  %v2442_v54 = vld [vmem:[%s3110_s1 + $0x340] sm:$0xff]  }
 0x63c   :  { %1767 = vmatprep.subr.bf16.mxu1 %v2451_v1 }
 0x63f   :  { %1768 = vmatpush1.bf16.msra.mxu1 %v2439_v16 }
 0x640   :  { %1769 = vmatprep.subr.bf16.mxu1 %v2451_v1 }
 0x643   :  { %1770 = vmatpush1.bf16.msra.mxu1 %v2440_v40 }
 0x644   :  { %1771 = vmatprep.subr.bf16.mxu1 %v2451_v1 }
 0x647   :  { %1772 = vmatpush1.bf16.msra.mxu1 %v2441_v41 }
 0x648   :  { %1773 = vmatprep.subr.bf16.mxu1 %v2451_v1 }
 0x64b   :  { %1774 = vmatpush1.bf16.msra.mxu1 %v2442_v54 }
 0x64c   :  { %1775 = vmatprep.subr.bf16.mxu1 %v2451_v1 }
 0x64f   :  { %1776 = vmatpush1.bf16.msra.mxu1 %v2443_v42 }
 0x650   :  { %1777 = vmatprep.subr.bf16.mxu1 %v2451_v1 }
 0x653   :  { %1778 = vmatpush1.bf16.msra.mxu1 %v2444_v43 }
 0x654   :  { %1779 = vmatprep.subr.bf16.mxu1 %v2451_v1 }
 0x657   :  { %1780 = vmatpush1.bf16.msra.mxu1 %v2445_v44 }
 0x658   :  { %1781 = vmatprep.subr.bf16.mxu1 %v2451_v1 }
 0x65b   :  { %1782 = vmatpush1.bf16.msra.mxu1 %v2446_v45 }
 0x65c   :  { %1783 = vmatprep.subr.bf16.mxu1 %v2451_v1 }
 0x65f   :  { %1784 = vmatpush1.bf16.msra.mxu1 %v2447_v46 }
 0x660   :  { %1785 = vmatprep.subr.bf16.mxu1 %v2451_v1 }
 0x663   :  { %1786 = vmatpush1.bf16.msra.mxu1 %v2448_v47 }
 0x664   :  { %1787 = vmatprep.subr.bf16.mxu1 %v2451_v1 }
 0x667   :  { %1788 = vmatpush1.bf16.msra.mxu1 %v2449_v48 }
 0x668   :  { %1789 = vmatprep.subr.bf16.mxu1 %v2451_v1 }
 0x66b   :  { %1790 = vmatpush1.bf16.msra.mxu1 %v1763_v50 }
 0x66e   :  { %1798 = vmatmul.mubr.bf16.vlgmr.msra.gmra.mrb[24].mxu1 %v2628_v53 }
 0x70d   :  { %v1654_v55 = vpop.f32.mrb[20].mxu1 }
 0x70e   :  { %v1660_v56 = vadd.f32 %v1654_v55, %v1468_v29  ;;  %v2314_v57 = vpop.f32.mrb[21].mxu1 }
 0x70f   :  { %v1657_v1 = vpop.f32.mrb[22].mxu1 }
 0x710   :  { %v2315_v58 = vpop.f32.mrb[23].mxu1 }
 0x741   :  { %v1799_v59 = vpop.f32.mrb[24].mxu1 }
 0x742   :  { %v1801_v60 = vpop.f32.mrb[25].mxu1 }
 0x743   :  { %v1802_v61 = vpop.f32.mrb[26].mxu1 }
 0x744   :  { %v1808_v53 = vpack.c.bf16 %v1802_v61, %v1799_v59  ;;  %v1804_v62 = vpop.f32.mrb[27].mxu1 }
 0x746   :  { %2317 = vmatpush3.bf16.msra.mxu0 %v1808_v53 }
 0x749   :  { %2319 = vmatmul.mubr.msk.bf16.vlgmr.msra.gmra.mrb[44].mxu0 %vm422_vm5, %v2248_v63 }
 0x81c   :  { %v1846_v3 = vpop.f32.mrb[44].mxu0 }
 0x81d   :  { %v1852_v4 = vadd.f32 %v1846_v3, %v1660_v56  ;;  %v2320_v5 = vpop.f32.mrb[45].mxu0 }
 0x81e   :  { %v1849_v6 = vpop.f32.mrb[46].mxu0 }
 0x81f   :  { %v1859_v7 = vadd.f32 %v1857_v0, %v1852_v4  ;;  %v2321_v8 = vpop.f32.mrb[47].mxu0 }
 0x821   :  { %v1860_v10 = vmax.f32 %v1859_v7, 0.0 }
 0x823   :  { %v1882_v11 = vmul.f32 %v1880_v9, %v1860_v10  ;;  %v1862_v12 = vmul.f32 %v1877_v52, %v1860_v10 }
 0x825   :  { %1884 = vrot.lane.b32.xlu0 %v1882_v11, %s2456_s4  ;;  %v1864_v13 = vsel %vm1863_vm6, %v1862_v12, 0.0 }
 0x826   :  { %1865 = vadd.xlane.f32.xlu1 %v1864_v13 }
 0x897   :  { %v1885_v14 = vpop.permute.xlu0 %1884 }
 0x898   :  { %v1887_v15 = vsel %vm1863_vm6, %v1885_v14, 0.0 }
 0x899   :  { %1888 = vadd.xlane.f32.xlu0 %v1887_v15 }
 0x8b3   :  { %v1866_v17 = vpop.xlane.xlu1 %1865 }
 0x8b4   :  { %v1867_v18 = vrot.slane %v1866_v17, 4 }
 0x8b6   :  { %v1868_v19 = vadd.f32 %v1867_v18, %v1866_v17 }
 0x8b8   :  { %v1869_v20 = vrot.slane %v1868_v19, 2 }
 0x8ba   :  { %v1870_v21 = vadd.f32 %v1869_v20, %v1868_v19 }
 0x8bc   :  { %v1871_v22 = vrot.slane %v1870_v21, 1 }
 0x8be   :  { %v1872_v24 = vadd.f32 %v1871_v22, %v1870_v21 }
 0x8c0   :  { %v1874_v25 = vadd.f32 %v1873_v23, %v1872_v24 }
 0x8c2   :  { %1876 = vst.msk [vmem:[%s3115_s8] sm:$0x1] %vm1875_vm7, %v1874_v25 }
 0x926   :  { %v1889_v26 = vpop.xlane.xlu0 %1888 }
 0x927   :  { %v1890_v27 = vrot.slane %v1889_v26, 4 }
 0x929   :  { %v1891_v28 = vadd.f32 %v1890_v27, %v1889_v26 }
 0x92b   :  { %v1892_v29 = vrot.slane %v1891_v28, 2 }
 0x92d   :  { %v1893_v30 = vadd.f32 %v1892_v29, %v1891_v28 }
 0x92f   :  { %v1894_v31 = vrot.slane %v1893_v30, 1 }
 0x931   :  { %v1895_v33 = vadd.f32 %v1894_v31, %v1893_v30 }
 0x933   :  { %v1897_v34 = vadd.f32 %v1896_v32, %v1895_v33 }
 0x935   :  { %1898 = vst.msk [vmem:[%s3115_s8 + $0x1] sm:$0x1] %vm1875_vm7, %v1897_v34 }

</bundles_post_ra>
